<compile_context>
chip_gen: v5e
topology: v5e:2x2
jax: 0.10.0
libtpu: 0.0.40
codegen_flags: <defaults>
</compile_context>

<pallas_src>
import math
import functools

import jax
import jax.numpy as jnp
from jax import lax
from jax.experimental import pallas as pl
from jax.experimental.pallas import tpu as pltpu


def _round_up(x, m):
    return ((x + m - 1) // m) * m


def _sublane(itemsize):
    # sublane rows per vreg tile: 8 for 4-byte, 16 for 2-byte, 32 for 1-byte
    return {4: 8, 2: 16, 1: 32}.get(int(itemsize), 8)


def _vmem_limit_bytes():
    # Budget-aware VMEM cap: conservative 48 MiB fallback (safe on v7x's 64 MiB
    # physical VMEM); larger tiles allowed on 128 MiB parts (v5e / v6e).
    try:
        cap = pltpu.get_tpu_info().vmem_capacity_bytes
    except Exception:
        cap = 64 * 1024 * 1024
    return min(int(cap * 3 // 4), 96 * 1024 * 1024)


# ---------------------------------------------------------------------------
# Hoisted projection kernel: y = (x @ W + b) * scale, cast to store dtype.
# ---------------------------------------------------------------------------
def _linear_kernel(x_ref, w_ref, b_ref, o_ref, *, scale):
    y = jnp.dot(x_ref[...], w_ref[...], preferred_element_type=jnp.float32)
    y = y + b_ref[...]
    if scale != 1.0:
        y = y * scale
    o_ref[...] = y.astype(o_ref.dtype)


def _project(x, w, b, out_dim_p, *, scale, store_dtype, vmem_limit):
    """x: (B, S, d_in) -> (B, S, out_dim_p); padded head columns are zero."""
    B, S, d_in = x.shape
    d_out = w.shape[1]
    w_p = jnp.pad(w, ((0, 0), (0, out_dim_p - d_out))).astype(x.dtype)
    b_p = jnp.pad(b, (0, out_dim_p - d_out)).reshape(1, out_dim_p).astype(jnp.float32)

    rows = B * S
    sub = _sublane(x.dtype.itemsize)
    tr = min(512, _round_up(rows, sub))
    # keep the double-buffered x block modest even for large d_in
    while tr > sub and tr * d_in * x.dtype.itemsize * 2 > 8 * 1024 * 1024:
        tr = _round_up(tr // 2, sub)
    # TODO(synk): for very large d_in a k-reduction grid axis (tiled contraction)
    # would be needed; full-d_in blocks are fine for typical hidden sizes.
    rows_p = _round_up(rows, tr)
    x_flat = x.reshape(rows, d_in)
    if rows_p != rows:
        x_flat = jnp.pad(x_flat, ((0, rows_p - rows), (0, 0)))

    out = pl.pallas_call(
        functools.partial(_linear_kernel, scale=scale),
        out_shape=jax.ShapeDtypeStruct((rows_p, out_dim_p), store_dtype),
        grid_spec=pltpu.PrefetchScalarGridSpec(
            num_scalar_prefetch=0,
            grid=(rows_p // tr,),
            in_specs=[
                pl.BlockSpec((tr, d_in), lambda r: (r, 0)),
                pl.BlockSpec((d_in, out_dim_p), lambda r: (0, 0)),
                pl.BlockSpec((1, out_dim_p), lambda r: (0, 0)),
            ],
            out_specs=pl.BlockSpec((tr, out_dim_p), lambda r: (r, 0)),
        ),
        compiler_params=pltpu.CompilerParams(
            dimension_semantics=("parallel",),
            vmem_limit_bytes=vmem_limit,
        ),
    )(x_flat, w_p, b_p)
    return out[:rows].reshape(B, S, out_dim_p)


# ---------------------------------------------------------------------------
# Flash-style attention over the projected tensors.
# ---------------------------------------------------------------------------
def _online_softmax_update(s, v, m_sc, l_sc, acc_sc, compute_dtype):
    m_prev = m_sc[...]
    m_new = jnp.maximum(m_prev, jnp.max(s, axis=-1, keepdims=True))
    alpha = jnp.exp(m_prev - m_new)
    p = jnp.exp(s - m_new)
    l_sc[...] = alpha * l_sc[...] + jnp.sum(p, axis=-1, keepdims=True)
    acc_sc[...] = alpha * acc_sc[...] + jnp.einsum(
        "bqk,bkd->bqd", p.astype(compute_dtype), v,
        preferred_element_type=jnp.float32)
    m_sc[...] = m_new


def _attention_kernel(q_ref, k_ref, v_ref, out_ref, m_sc, l_sc, acc_sc,
                      *, sk_real, tk, needs_mask, compute_dtype):
    ki = pl.program_id(2)

    @pl.when(ki == 0)
    def _init():
        m_sc[...] = jnp.full_like(m_sc, -1e30)
        l_sc[...] = jnp.zeros_like(l_sc)
        acc_sc[...] = jnp.zeros_like(acc_sc)

    q = q_ref[...]          # (Bblk, tq, dkp)  -- already pre-scaled by 1/sqrt(d_k)
    k = k_ref[...]          # (Bblk, tk, dkp)
    v = v_ref[...]          # (Bblk, tk, dvp)

    # scores: contract feature dims directly (no K transpose), f32 accumulation
    s = jnp.einsum("bqd,bkd->bqk", q, k, preferred_element_type=jnp.float32)

    # TODO(synk): optional attention mask (masked_fill with -inf) not wired in;
    # the module's forward is exercised with mask=None.
    if needs_mask:
        # Only the last key tile can contain wrapper seq-padding; gate the
        # iota + compare + select so every other ki step skips it entirely.
        last = pl.num_programs(2) - 1

        @pl.when(ki != last)
        def _full_tile():
            _online_softmax_update(s, v, m_sc, l_sc, acc_sc, compute_dtype)

        @pl.when(ki == last)
        def _padded_tile():
            col = ki * tk + lax.broadcasted_iota(jnp.int32, s.shape, 2)
            s_m = jnp.where(col < sk_real, s, -1e30)
            _online_softmax_update(s_m, v, m_sc, l_sc, acc_sc, compute_dtype)
    else:
        _online_softmax_update(s, v, m_sc, l_sc, acc_sc, compute_dtype)

    @pl.when(ki == pl.num_programs(2) - 1)
    def _finalize():
        # exact normalization: once per (batch-block, q-tile), off the hot path
        out_ref[...] = (acc_sc[...] / l_sc[...]).astype(out_ref.dtype)


def cross_attention(Q, K, V, params, *, mask=None, mxu_dtype=None):
    """Q: (B, Sq, d_in); K, V: (B, Sk, d_in). Returns (B, Sq, d_v)."""
    assert mask is None  # TODO(synk): mask path not implemented (module tested with mask=None).
    wq, bq, wk, bk, wv, bv = params
    B, Sq, d_in = Q.shape
    Sk = K.shape[1]
    d_k = wq.shape[1]
    d_v = wv.shape[1]
    out_dtype = Q.dtype

    # MXU operand / projected-storage dtype.  bf16 for f32 inputs (full MXU
    # rate on v6e/v7x, half the streamed bytes); softmax state stays f32.
    if mxu_dtype is None:
        compute_dtype = jnp.bfloat16 if out_dtype == jnp.float32 else out_dtype
    else:
        compute_dtype = mxu_dtype
    compute_dtype = jnp.dtype(compute_dtype)

    # Lane-dense head dims (unmasked full-lane stores; zero-padded columns exact).
    dkp = _round_up(d_k, 128)
    dvp = _round_up(d_v, 128)

    vmem_limit = _vmem_limit_bytes()
    budget = vmem_limit // 2

    cds = compute_dtype.itemsize
    out_is = jnp.dtype(out_dtype).itemsize
    sub = _sublane(cds)  # dtype-aware sublane rounding (8 / 16 / 32 rows)

    tq = min(256, _round_up(Sq, sub))
    sq_p = _round_up(Sq, tq)

    # Batch blocking: for small Sq, per-step overhead dominates and MXU rows sit
    # empty; process Bblk batch elements per grid step.
    bblk = 1
    for cand in range(1, B + 1):
        if B % cand == 0 and cand * tq <= 512:
            bblk = cand

    tk = min(1024, _round_up(Sk, sub))

    def _vmem_need(tk_):
        stream = bblk * (tq * dkp + tk_ * (dkp + dvp)) * cds * 2   # dbl-buffered inputs
        out_b = bblk * tq * dvp * out_is * 2                       # dbl-buffered output
        scratch = bblk * tq * (dvp + 2) * 4                        # m, l, acc (f32)
        return stream + out_b + scratch

    while tk > sub and _vmem_need(tk) > budget:
        tk = _round_up(tk // 2, sub)
    sk_p = _round_up(Sk, tk)

    # Pad sequences so tiles divide evenly; padded key rows are masked in-kernel
    # (only on the last key tile), padded query rows are sliced off at the end.
    Qp = jnp.pad(Q, ((0, 0), (0, sq_p - Sq), (0, 0))) if sq_p != Sq else Q
    Kp = jnp.pad(K, ((0, 0), (0, sk_p - Sk), (0, 0))) if sk_p != Sk else K
    Vp = jnp.pad(V, ((0, 0), (0, sk_p - Sk), (0, 0))) if sk_p != Sk else V

    # Hoisted projections: each runs exactly once (not once per q-tile).
    # Q is pre-scaled by 1/sqrt(d_k) here (Sq*d_k muls instead of Sq*Sk).
    q_p = _project(Qp, wq, bq, dkp, scale=1.0 / math.sqrt(d_k),
                   store_dtype=compute_dtype, vmem_limit=vmem_limit)
    k_p = _project(Kp, wk, bk, dkp, scale=1.0,
                   store_dtype=compute_dtype, vmem_limit=vmem_limit)
    v_p = _project(Vp, wv, bv, dvp, scale=1.0,
                   store_dtype=compute_dtype, vmem_limit=vmem_limit)

    needs_mask = (sk_p != Sk)
    grid = (B // bblk, sq_p // tq, sk_p // tk)

    kernel = functools.partial(
        _attention_kernel,
        sk_real=Sk, tk=tk, needs_mask=needs_mask, compute_dtype=compute_dtype)

    out_p = pl.pallas_call(
        kernel,
        out_shape=jax.ShapeDtypeStruct((B, sq_p, dvp), out_dtype),
        grid_spec=pltpu.PrefetchScalarGridSpec(
            num_scalar_prefetch=0,
            grid=grid,
            in_specs=[
                pl.BlockSpec((bblk, tq, dkp), lambda b, qi, ki: (b, qi, 0)),
                # TODO(synk): on v5e, pipeline_mode=pl.Buffered(3) on the K/V
                # streams would hide exposed DMA latency for short per-step compute.
                pl.BlockSpec((bblk, tk, dkp), lambda b, qi, ki: (b, ki, 0)),
                pl.BlockSpec((bblk, tk, dvp), lambda b, qi, ki: (b, ki, 0)),
            ],
            out_specs=pl.BlockSpec((bblk, tq, dvp), lambda b, qi, ki: (b, qi, 0)),
            scratch_shapes=[
                pltpu.VMEM((bblk, tq, 1), jnp.float32),    # running max
                pltpu.VMEM((bblk, tq, 1), jnp.float32),    # running denom
                pltpu.VMEM((bblk, tq, dvp), jnp.float32),  # running PV accumulator
            ],
        ),
        compiler_params=pltpu.CompilerParams(
            dimension_semantics=("parallel", "parallel", "arbitrary"),
            vmem_limit_bytes=vmem_limit,
        ),
    )(q_p, k_p, v_p)

    return out_p[:, :Sq, :d_v]


def reference(Q, K, V, params):
    wq, bq, wk, bk, wv, bv = params
    q = Q @ wq + bq
    k = K @ wk + bk
    v = V @ wv + bv
    d_k = wq.shape[1]
    scores = jnp.einsum("bqd,bkd->bqk", q, k) / math.sqrt(d_k)
    w = jax.nn.softmax(scores, axis=-1)
    return jnp.einsum("bqk,bkv->bqv", w, v)


if __name__ == "__main__":
    # Small shapes consistent with the module: batch=2, seq=8, d_in=32, d_k=32, d_v=32
    B, Sq, Sk, d_in, d_k, d_v = 2, 8, 8, 32, 32, 32

    key = jax.random.PRNGKey(0)
    keys = jax.random.split(key, 9)

    # nn.Linear-style uniform(-1/sqrt(d_in), 1/sqrt(d_in)) init.
    bound = 1.0 / math.sqrt(d_in)
    wq = jax.random.uniform(keys[0], (d_in, d_k), jnp.float32, -bound, bound)
    bq = jax.random.uniform(keys[1], (d_k,), jnp.float32, -bound, bound)
    wk = jax.random.uniform(keys[2], (d_in, d_k), jnp.float32, -bound, bound)
    bk = jax.random.uniform(keys[3], (d_k,), jnp.float32, -bound, bound)
    wv = jax.random.uniform(keys[4], (d_in, d_v), jnp.float32, -bound, bound)
    bv = jax.random.uniform(keys[5], (d_v,), jnp.float32, -bound, bound)
    params = (wq, bq, wk, bk, wv, bv)

    Q = jax.random.normal(keys[6], (B, Sq, d_in), jnp.float32)
    K = jax.random.normal(keys[7], (B, Sk, d_in), jnp.float32)
    V = jax.random.normal(keys[8], (B, Sk, d_in), jnp.float32)

    ref = reference(Q, K, V, params)

    # Default path: bf16 MXU operands (v6e/v7x fast path), f32 accumulation.
    out_bf16 = jax.block_until_ready(cross_attention(Q, K, V, params))
    assert out_bf16.shape == (B, Sq, d_v)
    assert jnp.allclose(out_bf16, ref, atol=2e-2, rtol=2e-2), float(
        jnp.max(jnp.abs(out_bf16 - ref)))

    # Exact f32 path (no bf16 operands): tight tolerance.
    out_f32 = jax.block_until_ready(
        cross_attention(Q, K, V, params, mxu_dtype=jnp.float32))
    assert out_f32.shape == (B, Sq, d_v)
    assert jnp.allclose(out_f32, ref, atol=1e-4, rtol=1e-4), float(
        jnp.max(jnp.abs(out_f32 - ref)))

    print("KERNEL_OK")
</pallas_src>

<mosaic_0001>
module attributes {stable_mosaic.version = 11 : i64} {
  func.func @_linear_kernel(%arg0: i32, %arg1: memref<32x32xf32, #tpu.memory_space<vmem>>, %arg2: memref<32x128xf32, #tpu.memory_space<vmem>>, %arg3: memref<1x128xf32, #tpu.memory_space<vmem>>, %arg4: memref<32x128xbf16, #tpu.memory_space<vmem>>) attributes {dimension_semantics = [#tpu.dimension_semantics<parallel>], iteration_bounds = array<i64: 1>, scalar_prefetch = 0 : i64, scratch_operands = 0 : i64, tpu.core_type = #tpu.core_type<tc>, window_params = [{transform_indices = @transform_0, window_bounds = array<i64: 32, 32>}, {pipeline_mode = #tpu.pipeline_mode<synchronous>, transform_indices = @transform_1, window_bounds = array<i64: 32, 128>}, {pipeline_mode = #tpu.pipeline_mode<synchronous>, transform_indices = @transform_2, window_bounds = array<i64: 1, 128>}, {transform_indices = @transform_3, window_bounds = array<i64: 32, 128>}]} {
    %c0 = arith.constant 0 : index
    %c0_0 = arith.constant 0 : index
    %0 = vector.load %arg1[%c0, %c0_0] : memref<32x32xf32, #tpu.memory_space<vmem>>, vector<32x32xf32>
    %c0_1 = arith.constant 0 : index
    %c0_2 = arith.constant 0 : index
    %1 = vector.load %arg2[%c0_1, %c0_2] : memref<32x128xf32, #tpu.memory_space<vmem>>, vector<32x128xf32>
    %cst = arith.constant dense<0.000000e+00> : vector<32x128xf32>
    %2 = tpu.matmul %0, %1, %cst {dimension_numbers = #tpu.dot_dimension_numbers<[1], [0], [0], [1], [0, 0, 1, 1], [], []>} : vector<32x32xf32>, vector<32x128xf32>, vector<32x128xf32> -> vector<32x128xf32>
    %c0_3 = arith.constant 0 : index
    %c0_4 = arith.constant 0 : index
    %3 = vector.load %arg3[%c0_3, %c0_4] : memref<1x128xf32, #tpu.memory_space<vmem>>, vector<1x128xf32>
    %4 = vector.broadcast %3 : vector<1x128xf32> to vector<32x128xf32>
    %5 = arith.addf %2, %4 : vector<32x128xf32>
    %cst_5 = arith.constant 0.176776692 : f32
    %6 = vector.broadcast %cst_5 : f32 to vector<32x128xf32>
    %7 = arith.mulf %5, %6 : vector<32x128xf32>
    %8 = arith.truncf %7 : vector<32x128xf32> to vector<32x128xbf16>
    %c0_6 = arith.constant 0 : index
    %c0_7 = arith.constant 0 : index
    %9 = vector.load %arg4[%c0_6, %c0_7] : memref<32x128xbf16, #tpu.memory_space<vmem>>, vector<32x128xbf16>
    tpu.vector_store %arg4[%c0_6, %c0_7], %8 {strides = array<i32>} : memref<32x128xbf16, #tpu.memory_space<vmem>>, vector<32x128xbf16>,
    return
  }
  func.func @transform_0(%arg0: i32) -> (i32, i32) {
    %c0_i32 = arith.constant 0 : i32
    %c0_i32_0 = arith.constant 0 : i32
    return %arg0, %c0_i32 : i32, i32
  }
  func.func @transform_1(%arg0: i32) -> (i32, i32) {
    %c0_i32 = arith.constant 0 : i32
    %c0_i32_0 = arith.constant 0 : i32
    %c0_i32_1 = arith.constant 0 : i32
    return %c0_i32, %c0_i32_0 : i32, i32
  }
  func.func @transform_2(%arg0: i32) -> (i32, i32) {
    %c0_i32 = arith.constant 0 : i32
    %c0_i32_0 = arith.constant 0 : i32
    %c0_i32_1 = arith.constant 0 : i32
    return %c0_i32, %c0_i32_0 : i32, i32
  }
  func.func @transform_3(%arg0: i32) -> (i32, i32) {
    %c0_i32 = arith.constant 0 : i32
    %c0_i32_0 = arith.constant 0 : i32
    return %arg0, %c0_i32 : i32, i32
  }
}

</mosaic_0001>

<bundles_post_ra>
// kernel: tpu_custom_call.1
= control target key start
LH: loop header
LB: loop body
LE: loop exit
PB: predicated region body
PF: predicated region fallthrough
CT: control target
= control target key end

     0   :  { %8 = vsyncpa [#allocation3], 0  ;;  %s285_s0 = inlined_call_operand.hbm [shape: f32[32,32], index: 0, kind: input, shape index: {}]   ;;  %s286_s1 = inlined_call_operand.hbm [shape: f32[32,128], index: 1, kind: input, shape index: {}]   ;;  %s287_s2 = inlined_call_operand.vmem [shape: f32[1,128], index: 2, kind: input, shape index: {}]   ;;  %s288_s3 = inlined_call_operand.hbm [shape: bf16[32,128], index: 3, kind: output, shape index: {}]  }
   0x1   :  { %9 = vsyncpa [#allocation6], 0 }
   0x2   :  { %10 = vsyncpa [#allocation4], 0  ;;  %s15_s14 = sshll.u32 %s285_s0, 4  ;;  %s246_s15 = smov [#allocation2]   ;;  %s16_s14 = int_to_ptr.hbm [resolvable:$true] %s15_s14 }
   0x3   :  { %s17_s16 = sshll.u32 %s246_s15, 4  ;;  %s28_s19 = sshll.u32 %s286_s1, 4  ;;  %s18_s16 = int_to_ptr.vmem [resolvable:$true] %s17_s16  ;;  %s29_s19 = int_to_ptr.hbm [resolvable:$true] %s28_s19 }
   0x4   :  { %s247_s20 = smov 128   ;;  %s248_s21 = smov 8  }
   0x5   :  { %23 = dma.hbm_to_vmem [thread:$0]  %s16_s14, 512, %s18_s16, [#allocation3], %s247_s20, %s247_s20, %s248_s21  }
   0x6   :  { %s249_s22 = smov [#allocation5]  }
   0x7   :  { %s30_s23 = sshll.u32 %s249_s22, 4  ;;  %s31_s23 = int_to_ptr.vmem [resolvable:$true] %s30_s23 }
   0x8   :  { %36 = dma.hbm_to_vmem [thread:$0]  %s29_s19, 512, %s31_s23, [#allocation6], %s247_s20, %s247_s20, %s248_s21  }
   0x9   :  { %240 = dma.done.wait [#allocation3], 512  }
   0xa   :  { %241 = vsyncadd [#allocation3], 4294966784 }
   0xb   :  { %242 = dma.done.wait [#allocation6], 512  }
   0xc   :  { %243 = vsyncadd [#allocation6], 4294966784  ;;  %v54_v0 = vld [vmem:[#allocation5 + $0x18] sm:$0xff]  ;;  %v53_v1 = vld [vmem:[#allocation5 + $0x10] sm:$0xff]  ;;  %vm59_vm0 = vcmask 261120   ;;  %s250_s24 = smov [#allocation7]  }
   0xd   :  { %149 = vmatpush.msra.mxu2 %v54_v0  ;;  %150 = vmatpush.msra.mxu3 %v54_v0  ;;  %v52_v2 = vld [vmem:[#allocation5 + $0x8] sm:$0xff]  ;;  %v51_v3 = vld [vmem:[#allocation5] sm:$0xff]  ;;  %v49_v4 = vld [vmem:[#allocation2 + $0x10] sm:$0xff]  ;;  %s117_s25 = sshll.u32 %s250_s24, 4  ;;  %s119_s28 = sshll.u32 %s288_s3, 4  ;;  %s118_s25 = int_to_ptr.vmem [resolvable:$true] %s117_s25  ;;  %s120_s28 = int_to_ptr.hbm [resolvable:$true] %s119_s28 }
   0xe   :  { %84 = vmatpush.msra.mxu0 %v54_v0  ;;  %148 = vmatpush.msra.mxu1 %v54_v0  ;;  %v50_v5 = vld [vmem:[#allocation2 + $0x18] sm:$0xff]  ;;  %v47_v6 = vld [vmem:[#allocation2] sm:$0xff]  ;;  %v48_v7 = vld [vmem:[#allocation2 + $0x8] sm:$0xff]  ;;  %s252_s29 = smov 4  }
   0xf   :  { %152 = vmatpush.msra.mxu2 %v53_v1  ;;  %153 = vmatpush.msra.mxu3 %v53_v1  ;;  %v167_v8 = vld [vmem:[%s287_s2] ss:$0 sm:$0xff]  ;;  %s251_s2 = smov 64  }
  0x10   :  { %85 = vmatpush.msra.mxu0 %v53_v1  ;;  %151 = vmatpush.msra.mxu1 %v53_v1 }
  0x11   :  { %155 = vmatpush.msra.mxu2 %v52_v2  ;;  %156 = vmatpush.msra.mxu3 %v52_v2 }
  0x12   :  { %86 = vmatpush.msra.mxu0 %v52_v2  ;;  %154 = vmatpush.msra.mxu1 %v52_v2 }
  0x13   :  { %158 = vmatpush.msra.mxu2 %v51_v3  ;;  %159 = vmatpush.msra.mxu3 %v51_v3 }
  0x14   :  { %135 = vmatmul.msk.f32.vlgmr.msra.gmra.mxu2 %vm59_vm0, %v49_v4  ;;  %136 = vmatmul.msk.f32.vlgmr.msra.gmra.mxu3 %vm59_vm0, %v50_v5 }
  0x15   :  { %87 = vmatpush.msra.mxu0 %v51_v3  ;;  %157 = vmatpush.msra.mxu1 %v51_v3 }
  0x16   :  { %133 = vmatmul.msk.f32.vlgmr.msra.gmra.mxu0 %vm59_vm0, %v47_v6  ;;  %134 = vmatmul.msk.f32.vlgmr.msra.gmra.mxu1 %vm59_vm0, %v48_v7 }
  0x93   :  { %v89_v9 = vpop.f32.mrf.mxu0  ;;  %v92_v10 = vpop.f32.mrf.mxu1 }
  0x94   :  { %v90_v11 = vadd.f32 %v167_v8, %v89_v9  ;;  %v93_v12 = vadd.f32 %v167_v8, %v92_v10 }
  0x96   :  { %v101_v13 = vmul.f32 0.17677669, %v90_v11  ;;  %v102_v14 = vmul.f32 0.17677669, %v93_v12 }
  0x97   :  { %v95_v15 = vpop.f32.mrf.mxu2  ;;  %v98_v16 = vpop.f32.mrf.mxu3 }
  0x98   :  { %v140_v17 = vpack.c.bf16 %v102_v14, %v101_v13  ;;  %v96_v18 = vadd.f32 %v167_v8, %v95_v15  ;;  %v99_v19 = vadd.f32 %v167_v8, %v98_v16 }
  0x9a   :  { %141 = vst [vmem:[#allocation7] sm:$0xff] %v140_v17   ;;  %v103_v20 = vmul.f32 0.17677669, %v96_v18  ;;  %v104_v21 = vmul.f32 0.17677669, %v99_v19 }
  0x9c   :  { %v145_v22 = vpack.c.bf16 %v104_v21, %v103_v20 }
  0x9e   :  { %147 = vst [vmem:[#allocation7 + $0x8] sm:$0xff] %v145_v22  }
  0x9f   :  { %125 = dma.vmem_to_hbm [thread:$0]  %s118_s25, 256, %s120_s28, [#allocation4], %s251_s2, %s251_s2, %s252_s29  }
  0xa0   :  { %244 = dma.done.wait [#allocation4], 256  }
  0xa1   :  { %245 = vsyncadd [#allocation4], 4294967040 }
  0xa2   :  { %130 = vsyncpa [#allocation3], 1 }
  0xa3   :  { %131 = vsyncpa [#allocation6], 1 }
  0xa4   :  { %132 = vsyncpa [#allocation4], 1 }

</bundles_post_ra>
